<compile_context>
chip_gen: v6e
topology: v6e:2x2x1
jax: 0.10.0
libtpu: 0.0.40
codegen_flags: <defaults>
</compile_context>

<pallas_src>
import jax
import jax.numpy as jnp
import numpy as np
from jax.experimental import pallas as pl
from jax.experimental.pallas import tpu as pltpu


def _initial_position_kernel(x_ref, o_ref):
    # x_ref: [N, T, Gt] block in VMEM; o_ref: [1, Gt] per-feature result row.
    x = x_ref[...].astype(jnp.float32)
    n, t, _ = x.shape
    n_elem = float(n * t)

    # Single sweep: per-feature sum and sum-of-squares.
    s = jnp.sum(x, axis=(0, 1))                       # [Gt]
    ss = jnp.sum(x * x, axis=(0, 1))                  # [Gt]
    mean_g = s / n_elem                               # [Gt]
    # Unbiased variance (torch.var default, correction=1); clamp tiny negative
    # round-off so sqrt stays finite (true-zero variance maps to 0 -> included).
    var_g = jnp.maximum((ss - s * mean_g) / (n_elem - 1.0), 0.0)

    # z < 3  <=>  x < mean + 3*sqrt(var)  when var > 0;
    # var == 0 -> reference's z is NaN -> 0 -> element always included.
    thr_g = mean_g + 3.0 * jnp.sqrt(var_g)            # [Gt]
    mask = (x < thr_g[None, None, :]) | (var_g == 0.0)[None, None, :]

    masked_sum = jnp.sum(jnp.where(mask, x, 0.0), axis=(0, 1))   # [Gt]
    count = jnp.sum(mask.astype(jnp.float32), axis=(0, 1))       # [Gt]
    col_mean = masked_sum / count                                # [Gt]

    o_ref[...] = col_mean[None, :].astype(o_ref.dtype)


def _pick_block_g(n, t, g, vmem_budget_bytes=8 * 1024 * 1024):
    """Largest lane-aligned Gt dividing G whose double-buffered f32 working set
    fits a conservative (v5e/v7x-safe) VMEM budget."""
    per_elem = 4  # f32 working precision inside the kernel
    for gt in (512, 256, 128):
        if g % gt == 0 and 2 * n * t * gt * per_elem <= vmem_budget_bytes:
            return gt
    # Feature axis small / not 128-aligned: take it as a single block.
    return g


def initial_position_forward(x, *, block_g=None):
    """x: [N, T, G] float array -> [T, G] (matches the PyTorch forward)."""
    N, T, G = x.shape
    gt = block_g if block_g is not None else _pick_block_g(N, T, G)
    if G % gt != 0:
        raise ValueError(f"block_g={gt} must divide G={G}")
    grid = (G // gt,)

    row = pl.pallas_call(
        _initial_position_kernel,
        out_shape=jax.ShapeDtypeStruct((1, G), x.dtype),
        grid=grid,
        in_specs=[pl.BlockSpec((N, T, gt), lambda g: (0, 0, g))],
        out_specs=pl.BlockSpec((1, gt), lambda g: (0, g)),
        compiler_params=pltpu.CompilerParams(
            dimension_semantics=("parallel",),
            vmem_limit_bytes=32 * 1024 * 1024,
        ),
    )(x)

    # Broadcast the per-feature scalar down the T axis outside the kernel
    # (no T-times store of identical rows from the kernel).
    return jnp.broadcast_to(row, (T, G))


def _reference(x):
    """Pure-JAX port of the PyTorch forward, for verification."""
    N, T, G = x.shape
    flat = x.astype(jnp.float32).reshape(N * T, G)
    mean = flat.mean(axis=0)
    var = flat.var(axis=0, ddof=1)
    z = (flat - mean) / jnp.sqrt(var)
    z = jnp.where(jnp.isnan(z), jnp.zeros_like(z), z)
    mask = z < 3.0
    col = jnp.sum(jnp.where(mask, flat, 0.0), axis=0) / jnp.sum(mask, axis=0)
    return jnp.broadcast_to(col[None, :], (T, G)).astype(x.dtype)


if __name__ == "__main__":
    key = jax.random.PRNGKey(0)
    N, T, G = 8, 8, 256  # small: 8 trajectories, seq 8, 256 features (2x128 lanes)
    x = jax.random.normal(key, (N, T, G), dtype=jnp.float32)

    ref = _reference(x)

    # Default (auto-picked) feature block.
    out = jax.block_until_ready(initial_position_forward(x))
    np.testing.assert_allclose(np.asarray(out), np.asarray(ref), rtol=1e-5, atol=1e-5)

    # Explicit 128-lane blocks -> grid of 2, exercises the multi-block path.
    out2 = jax.block_until_ready(initial_position_forward(x, block_g=128))
    np.testing.assert_allclose(np.asarray(out2), np.asarray(ref), rtol=1e-5, atol=1e-5)

    print("KERNEL_OK")
</pallas_src>

<mosaic_0001>
module attributes {stable_mosaic.version = 11 : i64} {
  func.func @_initial_position_kernel(%arg0: i32, %arg1: memref<8x8x256xf32, #tpu.memory_space<vmem>>, %arg2: memref<1x256xf32, #tpu.memory_space<vmem>>) attributes {dimension_semantics = [#tpu.dimension_semantics<parallel>], iteration_bounds = array<i64: 1>, scalar_prefetch = 0 : i64, scratch_operands = 0 : i64, tpu.core_type = #tpu.core_type<tc>, window_params = [{transform_indices = @transform_0, window_bounds = array<i64: 8, 8, 256>}, {transform_indices = @transform_1, window_bounds = array<i64: 1, 256>}]} {
    %c0 = arith.constant 0 : index
    %c0_0 = arith.constant 0 : index
    %c0_1 = arith.constant 0 : index
    %0 = vector.load %arg1[%c0, %c0_0, %c0_1] : memref<8x8x256xf32, #tpu.memory_space<vmem>>, vector<8x8x256xf32>
    %cst = arith.constant dense<0.000000e+00> : vector<256xf32>
    %1 = vector.multi_reduction <add>, %0, %cst [0, 1] : vector<8x8x256xf32> to vector<256xf32>
    %2 = arith.mulf %0, %0 : vector<8x8x256xf32>
    %cst_2 = arith.constant dense<0.000000e+00> : vector<256xf32>
    %3 = vector.multi_reduction <add>, %2, %cst_2 [0, 1] : vector<8x8x256xf32> to vector<256xf32>
    %cst_3 = arith.constant 6.400000e+01 : f32
    %4 = vector.broadcast %cst_3 : f32 to vector<256xf32>
    %5 = arith.divf %1, %4 : vector<256xf32>
    %6 = arith.mulf %1, %5 : vector<256xf32>
    %7 = arith.subf %3, %6 : vector<256xf32>
    %cst_4 = arith.constant 6.300000e+01 : f32
    %8 = vector.broadcast %cst_4 : f32 to vector<256xf32>
    %9 = arith.divf %7, %8 : vector<256xf32>
    %cst_5 = arith.constant 0.000000e+00 : f32
    %10 = vector.broadcast %cst_5 : f32 to vector<256xf32>
    %11 = arith.maximumf %9, %10 : vector<256xf32>
    %12 = math.sqrt %11 : vector<256xf32>
    %cst_6 = arith.constant 3.000000e+00 : f32
    %13 = vector.broadcast %cst_6 : f32 to vector<256xf32>
    %14 = arith.mulf %13, %12 : vector<256xf32>
    %15 = arith.addf %5, %14 : vector<256xf32>
    %16 = vector.shape_cast %15 : vector<256xf32> to vector<1x1x256xf32>
    %17 = vector.broadcast %16 : vector<1x1x256xf32> to vector<8x8x256xf32>
    %18 = arith.cmpf olt, %0, %17 : vector<8x8x256xf32>
    %cst_7 = arith.constant 0.000000e+00 : f32
    %19 = vector.broadcast %cst_7 : f32 to vector<256xf32>
    %20 = arith.cmpf oeq, %11, %19 : vector<256xf32>
    %21 = vector.shape_cast %20 : vector<256xi1> to vector<1x1x256xi1>
    %22 = vector.broadcast %21 : vector<1x1x256xi1> to vector<8x8x256xi1>
    %23 = arith.ori %18, %22 : vector<8x8x256xi1>
    %cst_8 = arith.constant 0.000000e+00 : f32
    %24 = vector.broadcast %cst_8 : f32 to vector<8x8x256xf32>
    %25 = arith.select %23, %0, %24 : vector<8x8x256xi1>, vector<8x8x256xf32>
    %cst_9 = arith.constant dense<0.000000e+00> : vector<256xf32>
    %26 = vector.multi_reduction <add>, %25, %cst_9 [0, 1] : vector<8x8x256xf32> to vector<256xf32>
    %27 = arith.extui %23 : vector<8x8x256xi1> to vector<8x8x256xi32>
    %28 = arith.sitofp %27 : vector<8x8x256xi32> to vector<8x8x256xf32>
    %cst_10 = arith.constant dense<0.000000e+00> : vector<256xf32>
    %29 = vector.multi_reduction <add>, %28, %cst_10 [0, 1] : vector<8x8x256xf32> to vector<256xf32>
    %30 = arith.divf %26, %29 : vector<256xf32>
    %31 = vector.shape_cast %30 : vector<256xf32> to vector<1x256xf32>
    %c0_11 = arith.constant 0 : index
    %c0_12 = arith.constant 0 : index
    %32 = vector.load %arg2[%c0_11, %c0_12] : memref<1x256xf32, #tpu.memory_space<vmem>>, vector<1x256xf32>
    tpu.vector_store %arg2[%c0_11, %c0_12], %31 {strides = array<i32>} : memref<1x256xf32, #tpu.memory_space<vmem>>, vector<1x256xf32>,
    return
  }
  func.func @transform_0(%arg0: i32) -> (i32, i32, i32) {
    %c0_i32 = arith.constant 0 : i32
    %c0_i32_0 = arith.constant 0 : i32
    %c0_i32_1 = arith.constant 0 : i32
    return %c0_i32, %c0_i32_0, %arg0 : i32, i32, i32
  }
  func.func @transform_1(%arg0: i32) -> (i32, i32) {
    %c0_i32 = arith.constant 0 : i32
    %c0_i32_0 = arith.constant 0 : i32
    return %c0_i32, %arg0 : i32, i32
  }
}

</mosaic_0001>

<bundles_post_ra>
// kernel: tpu_custom_call.1
= control target key start
LH: loop header
LB: loop body
LE: loop exit
PB: predicated region body
PF: predicated region fallthrough
CT: control target
= control target key end

     0   :  { %6 = vsyncpa [#allocation3], 0  ;;  %s693_s0 = inlined_call_operand.hbm [shape: f32[8,8,256], index: 0, kind: input, shape index: {}]   ;;  %s694_s1 = inlined_call_operand.hbm [shape: f32[1,256], index: 1, kind: output, shape index: {}]  }
   0x1   :  { %7 = vsyncpa [#allocation4], 0  ;;  %s413_s6 = smov [#allocation2]  }
   0x2   :  { %s13_s7 = sshll.u32 %s413_s6, 4  ;;  %s14_s7 = int_to_ptr.vmem [resolvable:$true] %s13_s7 }
   0x3   :  { %s377_s8 = scalar_lea.vmem %s14_s7, 2048  ;;  %p382_p1 = scmp.lt.s32.totalorder %s14_s7, %s14_s7 }
   0x4   :  { %p378_p0 = scmp.ne.s32.totalorder %s14_s7, %s377_s8  ;;  %p383_p2 = scmp.lt.s32.totalorder %s377_s8, %s377_s8 }
   0x6   :  { %p384_p3 = por %p383_p2, %p382_p1 }
   0x8   :  { %p385_p4 = pnand %p384_p3, %p378_p0 }
   0xa   :  { %388 = shalt.err (!%p385_p4)
}
   0xb   :  { %s414_s9 = smov 256   ;;  %s415_s10 = smov 16  }
   0xc   :  { %19 = dma.hbm_to_vmem [thread:$0]  %s693_s0, 2048, %s14_s7, [#allocation3], %s414_s9, %s414_s9, %s415_s10  }
   0xd   :  { %409 = dma.done.wait [#allocation3], 2048  }
   0xe   :  { %410 = vsyncadd [#allocation3], 4294965248  ;;  %v432_v0 = vld [vmem:[#allocation2] sm:$0xff]  ;;  %v434_v1 = vld [vmem:[#allocation2 + $0x8] sm:$0xff]  ;;  %s418_s0 = smov [#allocation5]  }
   0xf   :  { %v436_v2 = vld [vmem:[#allocation2 + $0x10] sm:$0xff]  ;;  %v438_v3 = vld [vmem:[#allocation2 + $0x18] sm:$0xff]  ;;  %v440_v4 = vld [vmem:[#allocation2 + $0x20] sm:$0xff]  ;;  %v65_v7 = vmul.f32 %v432_v0, %v432_v0  ;;  %v66_v10 = vmul.f32 %v434_v1, %v434_v1  ;;  %s330_s13 = sshll.u32 %s418_s0, 4  ;;  %s331_s13 = int_to_ptr.vmem [resolvable:$true] %s330_s13 }
  0x10   :  { %v442_v5 = vld [vmem:[#allocation2 + $0x28] sm:$0xff]  ;;  %v39_v6 = vadd.f32 %v436_v2, %v432_v0  ;;  %v448_v8 = vld [vmem:[#allocation2 + $0x30] sm:$0xff]  ;;  %v52_v9 = vadd.f32 %v438_v3, %v434_v1  ;;  %v67_v11 = vmul.f32 %v436_v2, %v436_v2  ;;  %v68_v12 = vmul.f32 %v438_v3, %v438_v3  ;;  %v458_v13 = vld [vmem:[#allocation2 + $0x38] sm:$0xff]  ;;  %s389_s14 = scalar_lea.vmem %s331_s13, 32  ;;  %p394_p6 = scmp.lt.s32.totalorder %s331_s13, %s331_s13 }
  0x11   :  { %v461_v15 = vld [vmem:[#allocation2 + $0x40] sm:$0xff]  ;;  %v69_v17 = vmul.f32 %v440_v4, %v440_v4  ;;  %v70_v18 = vmul.f32 %v442_v5, %v442_v5  ;;  %v468_v19 = vld [vmem:[#allocation2 + $0x48] sm:$0xff]  ;;  %v71_v21 = vmul.f32 %v448_v8, %v448_v8  ;;  %v473_v22 = vld [vmem:[#allocation2 + $0x50] sm:$0xff]  ;;  %v72_v24 = vmul.f32 %v458_v13, %v458_v13  ;;  %p390_p5 = scmp.ne.s32.totalorder %s331_s13, %s389_s14  ;;  %p395_p7 = scmp.lt.s32.totalorder %s389_s14, %s389_s14 }
  0x12   :  { %v40_v14 = vadd.f32 %v39_v6, %v440_v4  ;;  %v53_v16 = vadd.f32 %v52_v9, %v442_v5  ;;  %v81_v25 = vadd.f32 %v67_v11, %v65_v7  ;;  %v94_v26 = vadd.f32 %v68_v12, %v66_v10  ;;  %v478_v27 = vld [vmem:[#allocation2 + $0x58] sm:$0xff]  ;;  %v483_v30 = vld [vmem:[#allocation2 + $0x60] sm:$0xff]  ;;  %v488_v35 = vld [vmem:[#allocation2 + $0x68] sm:$0xff] }
  0x13   :  { %v73_v29 = vmul.f32 %v461_v15, %v461_v15  ;;  %v74_v32 = vmul.f32 %v468_v19, %v468_v19  ;;  %v75_v37 = vmul.f32 %v473_v22, %v473_v22  ;;  %v493_v38 = vld [vmem:[#allocation2 + $0x70] sm:$0xff]  ;;  %v76_v40 = vmul.f32 %v478_v27, %v478_v27  ;;  %v498_v43 = vld [vmem:[#allocation2 + $0x78] sm:$0xff]  ;;  %p396_p8 = por %p395_p7, %p394_p6 }
  0x14   :  { %v41_v20 = vadd.f32 %v40_v14, %v448_v8  ;;  %v54_v23 = vadd.f32 %v53_v16, %v458_v13  ;;  %v82_v33 = vadd.f32 %v81_v25, %v69_v17  ;;  %v95_v34 = vadd.f32 %v94_v26, %v70_v18 }
  0x15   :  { %v77_v45 = vmul.f32 %v483_v30, %v483_v30  ;;  %v78_v47 = vmul.f32 %v488_v35, %v488_v35  ;;  %v79_v51 = vmul.f32 %v493_v38, %v493_v38  ;;  %v80_v53 = vmul.f32 %v498_v43, %v498_v43  ;;  %p397_p9 = pnand %p396_p8, %p390_p5 }
  0x16   :  { %v42_v28 = vadd.f32 %v41_v20, %v461_v15  ;;  %v55_v31 = vadd.f32 %v54_v23, %v468_v19  ;;  %v83_v41 = vadd.f32 %v82_v33, %v71_v21  ;;  %v96_v42 = vadd.f32 %v95_v34, %v72_v24 }
  0x18   :  { %v43_v36 = vadd.f32 %v42_v28, %v473_v22  ;;  %v56_v39 = vadd.f32 %v55_v31, %v478_v27  ;;  %v84_v48 = vadd.f32 %v83_v41, %v73_v29  ;;  %v97_v49 = vadd.f32 %v96_v42, %v74_v32 }
  0x1a   :  { %v44_v44 = vadd.f32 %v43_v36, %v483_v30  ;;  %v57_v46 = vadd.f32 %v56_v39, %v488_v35  ;;  %v85_v54 = vadd.f32 %v84_v48, %v75_v37  ;;  %v98_v55 = vadd.f32 %v97_v49, %v76_v40 }
  0x1c   :  { %v45_v50 = vadd.f32 %v44_v44, %v493_v38  ;;  %v58_v52 = vadd.f32 %v57_v46, %v498_v43  ;;  %v86_v58 = vadd.f32 %v85_v54, %v77_v45  ;;  %v99_v59 = vadd.f32 %v98_v55, %v78_v47 }
  0x1e   :  { %v46_v56 = vrot.slane %v45_v50, 4  ;;  %v59_v57 = vrot.slane %v58_v52, 4  ;;  %v87_v62 = vadd.f32 %v86_v58, %v79_v51  ;;  %v100_v63 = vadd.f32 %v99_v59, %v80_v53 }
  0x20   :  { %v47_v60 = vadd.f32 %v46_v56, %v45_v50  ;;  %v60_v61 = vadd.f32 %v59_v57, %v58_v52  ;;  %v88_v9 = vrot.slane %v87_v62, 4  ;;  %v101_v10 = vrot.slane %v100_v63, 4 }
  0x22   :  { %v48_v6 = vrot.slane %v47_v60, 2  ;;  %v61_v7 = vrot.slane %v60_v61, 2  ;;  %v89_v14 = vadd.f32 %v88_v9, %v87_v62  ;;  %v102_v16 = vadd.f32 %v101_v10, %v100_v63 }
  0x24   :  { %v49_v11 = vadd.f32 %v48_v6, %v47_v60  ;;  %v62_v12 = vadd.f32 %v61_v7, %v60_v61  ;;  %v90_v20 = vrot.slane %v89_v14, 2  ;;  %v103_v21 = vrot.slane %v102_v16, 2 }
  0x25   :  { %v416_v7 = vmov 0.0  }
  0x26   :  { %v50_v17 = vrot.slane %v49_v11, 1  ;;  %v63_v18 = vrot.slane %v62_v12, 1  ;;  %v91_v25 = vadd.f32 %v90_v20, %v89_v14  ;;  %v104_v26 = vadd.f32 %v103_v21, %v102_v16 }
  0x28   :  { %v51_v23 = vadd.f32 %v50_v17, %v49_v11  ;;  %v64_v24 = vadd.f32 %v63_v18, %v62_v12  ;;  %v92_v29 = vrot.slane %v91_v25, 1  ;;  %v105_v31 = vrot.slane %v104_v26, 1 }
  0x2a   :  { %v108_v28 = vmul.f32 0.015625, %v51_v23  ;;  %v109_v32 = vmul.f32 0.015625, %v64_v24  ;;  %v93_v34 = vadd.f32 %v92_v29, %v91_v25  ;;  %v106_v36 = vadd.f32 %v105_v31, %v104_v26 }
  0x2c   :  { %v110_v33 = vmul.f32 %v108_v28, %v51_v23  ;;  %v111_v37 = vmul.f32 %v109_v32, %v64_v24 }
  0x2e   :  { %v112_v39 = vsub.f32 %v93_v34, %v110_v33  ;;  %v113_v40 = vsub.f32 %v106_v36, %v111_v37 }
  0x30   :  { %v115_v41 = vmul.f32 0.015873017, %v112_v39  ;;  %v116_v42 = vmul.f32 0.015873017, %v113_v40 }
  0x32   :  { %v512_v44 = vmax.f32 %v115_v41, 0.0  ;;  %v514_v45 = vmax.f32 %v116_v42, 0.0 }
  0x34   :  { %361 = vrsqrt.f32 %v512_v44  ;;  %vm121_vm0 = vcmp.eq.f32.partialorder %v512_v44, inf  ;;  %v124_v47 = vand.u32 2147483648, %v512_v44  ;;  %vm123_vm1 = vcmp.eq.f32.partialorder %v512_v44, 0.0 }
  0x35   :  { %363 = vrsqrt.f32 %v514_v45  ;;  %vm128_vm2 = vcmp.eq.f32.partialorder %v514_v45, inf  ;;  %v131_v50 = vand.u32 2147483648, %v514_v45  ;;  %vm130_vm3 = vcmp.eq.f32.partialorder %v514_v45, 0.0 }
  0x41   :  { %v362_v46 = vpop.eup %361 }
  0x42   :  { %v364_v48 = vpop.eup %363  ;;  %v120_v49 = vmul.f32 %v362_v46, %v512_v44 }
  0x43   :  { %v127_v51 = vmul.f32 %v364_v48, %v514_v45 }
  0x44   :  { %v122_v52 = vsel %vm121_vm0, %v512_v44, %v120_v49 }
  0x45   :  { %v125_v53 = vsel %vm123_vm1, %v124_v47, %v122_v52  ;;  %v129_v54 = vsel %vm128_vm2, %v514_v45, %v127_v51 }
  0x46   :  { %v132_v55 = vsel %vm130_vm3, %v131_v50, %v129_v54  ;;  %v133_v56 = vmul.f32 3.0, %v125_v53 }
  0x47   :  { %v134_v57 = vmul.f32 3.0, %v132_v55 }
  0x48   :  { %v532_v58 = vadd.f32 %v133_v56, %v108_v28 }
  0x49   :  { %v534_v59 = vadd.f32 %v134_v57, %v109_v32 }
  0x4a   :  { %vm137_vm4 = vcmp.lt.f32.partialorder %v432_v0, %v532_v58  ;;  %vm139_vm5 = vcmp.lt.f32.partialorder %v436_v2, %v532_v58  ;;  %vm141_vm8 = vcmp.lt.f32.partialorder %v440_v4, %v532_v58  ;;  %vm143_vm9 = vcmp.lt.f32.partialorder %v448_v8, %v532_v58 }
  0x4b   :  { %vm138_vm6 = vcmp.lt.f32.partialorder %v434_v1, %v534_v59  ;;  %vm140_vm7 = vcmp.lt.f32.partialorder %v438_v3, %v534_v59  ;;  %vm550_vm10 = vmor %vm137_vm4, %vm123_vm1  ;;  %vm142_vm11 = vcmp.lt.f32.partialorder %v442_v5, %v534_v59  ;;  %vm144_vm12 = vcmp.lt.f32.partialorder %v458_v13, %v534_v59 }
  0x4c   :  { %vm564_vm15 = vmor %vm138_vm6, %vm130_vm3  ;;  %vm147_vm0 = vcmp.lt.f32.partialorder %v473_v22, %v532_v58  ;;  %vm149_vm4 = vcmp.lt.f32.partialorder %v483_v30, %v532_v58  ;;  %vm150_vm13 = vcmp.lt.f32.partialorder %v488_v35, %v534_v59  ;;  %vm151_vm14 = vcmp.lt.f32.partialorder %v493_v38, %v532_v58 }
  0x4d   :  { %vm183_vm6 = vmor %vm139_vm5, %vm123_vm1  ;;  %v197_v62 = vsel %vm550_vm10, %v432_v0, 0.0  ;;  %v198_v63 = vsel %vm564_vm15, %v434_v1, 0.0  ;;  %v339_v9 = vsel %vm550_vm10, 1.0, %v416_v7  ;;  %vm152_vm5 = vcmp.lt.f32.partialorder %v498_v43, %v534_v59 }
  0x4e   :  { %vm184_vm2 = vmor %vm140_vm7, %vm130_vm3  ;;  %v199_v6 = vsel %vm183_vm6, %v436_v2, 0.0  ;;  %v340_v1 = vsel %vm564_vm15, 1.0, %v416_v7  ;;  %v341_v2 = vsel %vm183_vm6, 1.0, %v416_v7 }
  0x4f   :  { %vm185_vm7 = vmor %vm141_vm8, %vm123_vm1  ;;  %v200_v0 = vsel %vm184_vm2, %v438_v3, 0.0  ;;  %v213_v10 = vadd.f32 %v199_v6, %v197_v62  ;;  %v342_v14 = vsel %vm184_vm2, 1.0, %v416_v7  ;;  %v271_v20 = vadd.f32 %v341_v2, %v339_v9 }
  0x50   :  { %vm186_vm10 = vmor %vm142_vm11, %vm130_vm3  ;;  %v201_v11 = vsel %vm185_vm7, %v440_v4, 0.0  ;;  %v226_v12 = vadd.f32 %v200_v0, %v198_v63  ;;  %v343_v3 = vsel %vm185_vm7, 1.0, %v416_v7  ;;  %v284_v24 = vadd.f32 %v342_v14, %v340_v1 }
  0x51   :  { %vm187_vm8 = vmor %vm143_vm9, %vm123_vm1  ;;  %v202_v16 = vsel %vm186_vm10, %v442_v5, 0.0  ;;  %v214_v17 = vadd.f32 %v213_v10, %v201_v11  ;;  %v344_v18 = vsel %vm186_vm10, 1.0, %v416_v7  ;;  %vm699_vm9 = vcmp.lt.f32.partialorder %v461_v15, %v532_v58 }
  0x52   :  { %vm188_vm11 = vmor %vm144_vm12, %vm130_vm3  ;;  %v203_v4 = vsel %vm187_vm8, %v448_v8, 0.0  ;;  %v227_v21 = vadd.f32 %v226_v12, %v202_v16  ;;  %v345_v23 = vsel %vm187_vm8, 1.0, %v416_v7  ;;  %v272_v28 = vadd.f32 %v343_v3, %v271_v20 }
  0x53   :  { %vm189_vm15 = vmor %vm699_vm9, %vm123_vm1  ;;  %v204_v5 = vsel %vm188_vm11, %v458_v13, 0.0  ;;  %v215_v25 = vadd.f32 %v214_v17, %v203_v4  ;;  %v346_v26 = vsel %vm188_vm11, 1.0, %v416_v7  ;;  %vm700_vm12 = vcmp.lt.f32.partialorder %v468_v19, %v534_v59 }
  0x54   :  { %vm190_vm2 = vmor %vm700_vm12, %vm130_vm3  ;;  %v205_v8 = vsel %vm189_vm15, %v461_v15, 0.0  ;;  %v228_v29 = vadd.f32 %v227_v21, %v204_v5  ;;  %v347_v31 = vsel %vm189_vm15, 1.0, %v416_v7  ;;  %v285_v32 = vadd.f32 %v344_v18, %v284_v24 }
  0x55   :  { %vm191_vm6 = vmor %vm147_vm0, %vm123_vm1  ;;  %v206_v13 = vsel %vm190_vm2, %v468_v19, 0.0  ;;  %v216_v33 = vadd.f32 %v215_v25, %v205_v8  ;;  %v348_v34 = vsel %vm190_vm2, 1.0, %v416_v7  ;;  %v273_v36 = vadd.f32 %v345_v23, %v272_v28 }
  0x56   :  { %vm701_vm7 = vcmp.lt.f32.partialorder %v478_v27, %v534_v59  ;;  %v207_v15 = vsel %vm191_vm6, %v473_v22, 0.0  ;;  %v229_v37 = vadd.f32 %v228_v29, %v206_v13  ;;  %v349_v39 = vsel %vm191_vm6, 1.0, %v416_v7  ;;  %vm193_vm0 = vmor %vm149_vm4, %vm123_vm1 }
  0x57   :  { %vm192_vm10 = vmor %vm701_vm7, %vm130_vm3  ;;  %v286_v40 = vadd.f32 %v346_v26, %v285_v32  ;;  %v217_v41 = vadd.f32 %v216_v33, %v207_v15  ;;  %v274_v46 = vadd.f32 %v347_v31, %v273_v36  ;;  %v209_v22 = vsel %vm193_vm0, %v483_v30, 0.0 }
  0x58   :  { %v208_v19 = vsel %vm192_vm10, %v478_v27, 0.0  ;;  %v350_v42 = vsel %vm192_vm10, 1.0, %v416_v7  ;;  %vm194_vm8 = vmor %vm150_vm13, %vm130_vm3  ;;  %v351_v48 = vsel %vm193_vm0, 1.0, %v416_v7  ;;  %v417_v23 = vmov 1966171168  }
  0x59   :  { %v230_v47 = vadd.f32 %v229_v37, %v208_v19  ;;  %v287_v49 = vadd.f32 %v348_v34, %v286_v40  ;;  %vm195_vm4 = vmor %vm151_vm14, %vm123_vm1  ;;  %v210_v27 = vsel %vm194_vm8, %v488_v35, 0.0  ;;  %v218_v50 = vadd.f32 %v217_v41, %v209_v22 }
  0x5a   :  { %v352_v51 = vsel %vm194_vm8, 1.0, %v416_v7  ;;  %v275_v52 = vadd.f32 %v349_v39, %v274_v46  ;;  %vm196_vm13 = vmor %vm152_vm5, %vm130_vm3  ;;  %v211_v30 = vsel %vm195_vm4, %v493_v38, 0.0  ;;  %v353_v44 = vsel %vm195_vm4, 1.0, %v416_v7 }
  0x5b   :  { %v231_v53 = vadd.f32 %v230_v47, %v210_v27  ;;  %v288_v54 = vadd.f32 %v350_v42, %v287_v49  ;;  %v212_v55 = vsel %vm196_vm13, %v498_v43, 0.0  ;;  %v354_v35 = vsel %vm196_vm13, 1.0, %v416_v7 }
  0x5c   :  { %v276_v56 = vadd.f32 %v351_v48, %v275_v52  ;;  %v219_v58 = vadd.f32 %v218_v50, %v211_v30  ;;  %v305_v24 = vunpack.c.l.s4 %v417_v23  ;;  %v307_v5 = vlaneseq }
  0x5d   :  { %v289_v57 = vadd.f32 %v352_v51, %v288_v54  ;;  %v232_v61 = vadd.f32 %v231_v53, %v212_v55 }
  0x5e   :  { %v277_v60 = vadd.f32 %v353_v44, %v276_v56  ;;  %v220_v59 = vrot.slane %v219_v58, 4  ;;  %v306_v28 = vunpack.c.0.s8 %v305_v24  ;;  %v308_v8 = vshrl.u32 %v307_v5, 7 }
  0x5f   :  { %v290_v45 = vadd.f32 %v354_v35, %v289_v57  ;;  %v233_v9 = vrot.slane %v232_v61, 4  ;;  %vm321_vm1 = vcmp.lt.s32.totalorder %v307_v5, 256 }
  0x60   :  { %v278_v62 = vrot.slane %v277_v60, 4  ;;  %v221_v1 = vadd.f32 %v220_v59, %v219_v58  ;;  %v309_v33 = vsub.s32 %v306_v28, %v308_v8 }
  0x61   :  { %v291_v63 = vrot.slane %v290_v45, 4  ;;  %v234_v11 = vadd.f32 %v233_v9, %v232_v61 }
  0x62   :  { %v279_v6 = vadd.f32 %v278_v62, %v277_v60  ;;  %v222_v14 = vrot.slane %v221_v1, 2 }
  0x63   :  { %v292_v38 = vadd.f32 %v291_v63, %v290_v45  ;;  %v235_v16 = vrot.slane %v234_v11, 2 }
  0x64   :  { %v280_v0 = vrot.slane %v279_v6, 2  ;;  %v223_v18 = vadd.f32 %v222_v14, %v221_v1 }
  0x65   :  { %v293_v10 = vrot.slane %v292_v38, 2  ;;  %v236_v20 = vadd.f32 %v235_v16, %v234_v11 }
  0x66   :  { %v281_v2 = vadd.f32 %v280_v0, %v279_v6  ;;  %v224_v4 = vrot.slane %v223_v18, 1 }
  0x67   :  { %v294_v43 = vadd.f32 %v293_v10, %v292_v38  ;;  %v237_v21 = vrot.slane %v236_v20, 1 }
  0x68   :  { %v282_v12 = vrot.slane %v281_v2, 1  ;;  %v225_v25 = vadd.f32 %v224_v4, %v223_v18 }
  0x69   :  { %v295_v7 = vrot.slane %v294_v43, 1  ;;  %v238_v26 = vadd.f32 %v237_v21, %v236_v20 }
  0x6a   :  { %v283_v3 = vadd.f32 %v282_v12, %v281_v2 }
  0x6b   :  { %v296_v17 = vadd.f32 %v295_v7, %v294_v43 }
  0x6c   :  { %365 = vrcp.f32 %v283_v3 }
  0x6d   :  { %367 = vrcp.f32 %v296_v17 }
  0x79   :  { %v366_v29 = vpop.eup %365 }
  0x7a   :  { %v368_v31 = vpop.eup %367  ;;  %v298_v32 = vmul.f32 %v366_v29, %v225_v25 }
  0x7b   :  { %v300_v13 = vmul.f32 %v368_v31, %v238_v26 }
  0x7d   :  { %v303_v34 = vcombine.low %v298_v32, %v300_v13 }
  0x7f   :  { %v310_v36 = vrot.slane %v303_v34, %v309_v33 }
  0x81   :  { %v317_v15 = vrot.slane %v310_v36, %v309_v33 }
  0x83   :  { %323 = vst.msk [vmem:[#allocation5] sm:$0x3] %vm321_vm1, %v317_v15 }
  0x84   :  { %400 = shalt.err (!%p397_p9)
}
  0x85   :  { %333 = dma.vmem_to_hbm [thread:$0]  %s331_s13, 32, %s694_s1, [#allocation4]  }
  0x86   :  { %411 = dma.done.wait [#allocation4], 32  }
  0x87   :  { %412 = vsyncadd [#allocation4], 4294967264 }
  0x88   :  { %337 = vsyncpa [#allocation3], 1 }
  0x89   :  { %338 = vsyncpa [#allocation4], 1 }

</bundles_post_ra>
